<compile_context>
chip_gen: v7x
topology: tpu7x:2x2x1
jax: 0.10.0
libtpu: 0.0.40
codegen_flags: <defaults>
</compile_context>

<pallas_src>
import jax
import jax.numpy as jnp
import numpy as np
from jax.experimental import pallas as pl
from jax.experimental.pallas import tpu as pltpu


# ----------------------------------------------------------------------------
# Pallas kernel: one LSTM layer, all directions interleaved, whole sequence.
# ----------------------------------------------------------------------------
def _bilstm_layer_kernel(x_ref, wih_ref, whh_ref, b_ref,
                         hseq_ref, hlast_ref, clast_ref,
                         *xg_scrs):
    """Shapes (f32, gate order [i, f, o, g], batch % 8 == 0):

    x_ref:    (seq, batch, in)
    wih_ref:  (num_dirs, in, 4H)      (transposed PyTorch weight_ih)
    whh_ref:  (num_dirs, H, 4H)       (transposed PyTorch weight_hh)
    b_ref:    (num_dirs, 1, 4H)       (b_ih + b_hh fused)
    hseq_ref: (seq, batch, num_dirs*H)   fwd -> [..., :H], bwd -> [..., H:]
    hlast_ref / clast_ref: (num_dirs, batch, H)
    xg_scrs:  num_dirs x VMEM (seq, batch, 4H) precomputed input gates
    """
    seq_len, batch, in_feat = x_ref.shape
    num_dirs, H, _ = whh_ref.shape

    # ---- prologue: hoisted input projection over the whole sequence --------
    # batch is padded to a multiple of 8 by the wrapper, so this reshape is a
    # pure view (no sublane relayout).
    x2d = x_ref[...].reshape(seq_len * batch, in_feat)
    for d in range(num_dirs):
        xg = jnp.dot(x2d, wih_ref[d], preferred_element_type=jnp.float32)
        xg = xg + b_ref[d]                               # bias fused once
        xg_scrs[d][...] = xg.reshape(seq_len, batch, 4 * H)

    # ---- serial recurrence: both directions interleaved per step -----------
    def step(t, carry):
        new_carry = []
        for d in range(num_dirs):
            h_prev = carry[2 * d]
            c_prev = carry[2 * d + 1]
            # forward chain walks t; backward chain walks seq-1-t (scalar op,
            # no per-step jnp.where select).
            t_eff = t if d == 0 else seq_len - 1 - t
            # W_hh streamed from VMEM inside the dot (not pinned in vregs).
            gates = xg_scrs[d][t_eff] + jnp.dot(
                h_prev, whh_ref[d], preferred_element_type=jnp.float32)
            sig = jax.nn.sigmoid(gates[:, :3 * H])       # one EUP launch (i,f,o)
            g_g = jnp.tanh(gates[:, 3 * H:])             # one EUP launch (g)
            i_g = sig[:, :H]
            f_g = sig[:, H:2 * H]
            o_g = sig[:, 2 * H:3 * H]
            c_new = f_g * c_prev + i_g * g_g
            h_new = o_g * jnp.tanh(c_new)
            hseq_ref[t_eff, :, d * H:(d + 1) * H] = h_new
            new_carry += [h_new, c_new]
        return tuple(new_carry)

    init = tuple(jnp.zeros((batch, H), jnp.float32)
                 for _ in range(2 * num_dirs))
    final = jax.lax.fori_loop(0, seq_len, step, init)

    # final states written once (not every step)
    for d in range(num_dirs):
        hlast_ref[d] = final[2 * d]
        clast_ref[d] = final[2 * d + 1]


def lstm_layer_pallas(x_seq, w_ih_t, w_hh_t, bias, hidden_size, num_dirs):
    """One (bi-)LSTM layer.

    x_seq:  (seq, batch, in_features) f32
    w_ih_t: (num_dirs, in_features, 4H)
    w_hh_t: (num_dirs, H, 4H)
    bias:   (num_dirs, 1, 4H)

    Returns (h_seq, h_last, c_last) with shapes
      (seq, batch, num_dirs*H), (num_dirs, batch, H), (num_dirs, batch, H).
    """
    seq_len, batch, in_feat = x_seq.shape
    H = hidden_size

    # Pad batch to a multiple of 8 (sublane).  Padded rows are independent in
    # an LSTM and are sliced away again below.
    batch_p = ((batch + 7) // 8) * 8
    if batch_p != batch:
        x_seq = jnp.pad(x_seq, ((0, 0), (0, batch_p - batch), (0, 0)))

    out_shapes = (
        jax.ShapeDtypeStruct((seq_len, batch_p, num_dirs * H), jnp.float32),
        jax.ShapeDtypeStruct((num_dirs, batch_p, H), jnp.float32),
        jax.ShapeDtypeStruct((num_dirs, batch_p, H), jnp.float32),
    )

    h_seq, h_last, c_last = pl.pallas_call(
        _bilstm_layer_kernel,
        out_shape=out_shapes,
        in_specs=[
            pl.BlockSpec(memory_space=pltpu.MemorySpace.VMEM),
            pl.BlockSpec(memory_space=pltpu.MemorySpace.VMEM),
            pl.BlockSpec(memory_space=pltpu.MemorySpace.VMEM),
            pl.BlockSpec(memory_space=pltpu.MemorySpace.VMEM),
        ],
        out_specs=(
            pl.BlockSpec(memory_space=pltpu.MemorySpace.VMEM),
            pl.BlockSpec(memory_space=pltpu.MemorySpace.VMEM),
            pl.BlockSpec(memory_space=pltpu.MemorySpace.VMEM),
        ),
        scratch_shapes=[
            pltpu.VMEM((seq_len, batch_p, 4 * H), jnp.float32)
            for _ in range(num_dirs)
        ],
    )(x_seq, w_ih_t, w_hh_t, bias)

    if batch_p != batch:
        h_seq = h_seq[:, :batch, :]
        h_last = h_last[:, :batch, :]
        c_last = c_last[:, :batch, :]
    return h_seq, h_last, c_last


# ----------------------------------------------------------------------------
# Module-level forward (embedding + stacked bi-LSTM + direction sum)
# ----------------------------------------------------------------------------
def encoder_attention_lstm_forward(x_tokens, params):
    H = params["hidden_size"]
    num_dirs = 2 if params["bi_dir"] else 1

    # nn.Embedding lookup (glue).
    emb = jnp.take(params["embedding"], x_tokens, axis=0)   # (seq, batch, emb)
    # TODO(synk): nn.Dropout is stochastic in train mode; treated as identity
    # (eval-mode semantics) here.
    layer_in = emb

    hiddens, cells = [], []
    h_seq = None
    for lp in params["layers"]:
        # h_seq comes back lane-dense (seq, batch, num_dirs*H): no concat.
        h_seq, h_last, c_last = lstm_layer_pallas(
            layer_in, lp["w_ih"], lp["w_hh"], lp["bias"], H, num_dirs)
        layer_in = h_seq
        hiddens.append(h_last)     # (num_dirs, batch, H), fwd then bwd
        cells.append(c_last)

    if num_dirs == 2:
        # encoder_states[:, :, :H] + encoder_states[:, :, H:] of the last layer
        encoder_states = h_seq[..., :H] + h_seq[..., H:]
    else:
        encoder_states = h_seq

    hidden = jnp.concatenate(hiddens, axis=0)   # (num_layers*num_dirs, batch, H)
    cell = jnp.concatenate(cells, axis=0)
    return encoder_states, hidden, cell


# ----------------------------------------------------------------------------
# Pure-JAX reference (lax.scan) for correctness check.
# ----------------------------------------------------------------------------
def _lstm_layer_ref(x_seq, w_ih_t, w_hh_t, bias, H, reverse=False):
    def step(carry, x_t):
        h, c = carry
        gates = x_t @ w_ih_t + h @ w_hh_t + bias        # gate order [i,f,o,g]
        i = jax.nn.sigmoid(gates[:, :H])
        f = jax.nn.sigmoid(gates[:, H:2 * H])
        o = jax.nn.sigmoid(gates[:, 2 * H:3 * H])
        g = jnp.tanh(gates[:, 3 * H:])
        c = f * c + i * g
        h = o * jnp.tanh(c)
        return (h, c), h

    batch = x_seq.shape[1]
    init = (jnp.zeros((batch, H), jnp.float32),
            jnp.zeros((batch, H), jnp.float32))
    xs = x_seq[::-1] if reverse else x_seq
    (h_last, c_last), h_seq = jax.lax.scan(step, init, xs)
    if reverse:
        h_seq = h_seq[::-1]
    return h_seq, h_last, c_last


def encoder_ref(x_tokens, params):
    H = params["hidden_size"]
    num_dirs = 2 if params["bi_dir"] else 1
    layer_in = jnp.take(params["embedding"], x_tokens, axis=0)
    hiddens, cells = [], []
    h_seqs = None
    for lp in params["layers"]:
        h_seqs = []
        for d in range(num_dirs):
            h_s, h_l, c_l = _lstm_layer_ref(layer_in, lp["w_ih"][d],
                                            lp["w_hh"][d], lp["bias"][d], H,
                                            reverse=(d == 1))
            h_seqs.append(h_s)
            hiddens.append(h_l)
            cells.append(c_l)
        layer_in = jnp.concatenate(h_seqs, axis=-1) if num_dirs == 2 else h_seqs[0]
    enc = h_seqs[0] + h_seqs[1] if num_dirs == 2 else h_seqs[0]
    return enc, jnp.stack(hiddens, 0), jnp.stack(cells, 0)


# ----------------------------------------------------------------------------
# Deterministic parameter construction (PyTorch-style init, kernel layout).
# ----------------------------------------------------------------------------
def init_params(key, vocab_size, emb_size, hidden_size, num_layers, bi_dir):
    """Uniform(-1/sqrt(H), 1/sqrt(H)) init like nn.LSTM, kernel layout.

    Gate packing is [i, f, o, g] (PyTorch packs [i, f, g, o]); to import a
    PyTorch checkpoint, permute the four gate blocks of
    weight_ih / weight_hh / bias accordingly before transposing.
    """
    H = hidden_size
    scale = 1.0 / np.sqrt(H)
    num_dirs = 2 if bi_dir else 1

    key, k_emb = jax.random.split(key)
    embedding = jax.random.normal(k_emb, (vocab_size, emb_size),
                                  jnp.float32) * 0.1

    layers = []
    for layer in range(num_layers):
        in_feat = emb_size if layer == 0 else H * num_dirs
        wih_l, whh_l, b_l = [], [], []
        for _ in range(num_dirs):
            key, k1, k2, k3, k4 = jax.random.split(key, 5)
            w_ih = jax.random.uniform(k1, (4 * H, in_feat), jnp.float32,
                                      -scale, scale)
            w_hh = jax.random.uniform(k2, (4 * H, H), jnp.float32,
                                      -scale, scale)
            b_ih = jax.random.uniform(k3, (4 * H,), jnp.float32, -scale, scale)
            b_hh = jax.random.uniform(k4, (4 * H,), jnp.float32, -scale, scale)
            # kernel consumes transposed weights and a fused bias row-vector
            wih_l.append(w_ih.T)
            whh_l.append(w_hh.T)
            b_l.append((b_ih + b_hh).reshape(1, 4 * H))
        layers.append({
            "w_ih": jnp.stack(wih_l, axis=0),   # (num_dirs, in_feat, 4H)
            "w_hh": jnp.stack(whh_l, axis=0),   # (num_dirs, H, 4H)
            "bias": jnp.stack(b_l, axis=0),     # (num_dirs, 1, 4H)
        })

    return {
        "embedding": embedding,
        "layers": layers,
        "hidden_size": H,
        "bi_dir": bi_dir,
    }


if __name__ == "__main__":
    SEQ, BATCH = 8, 4
    VOCAB, EMB, HID, NLAYERS = 20, 16, 32, 2
    BIDIR = True

    key = jax.random.PRNGKey(0)
    key, k_tok = jax.random.split(key)
    x = jax.random.randint(k_tok, (SEQ, BATCH), 0, VOCAB, dtype=jnp.int32)

    params = init_params(key, VOCAB, EMB, HID, NLAYERS, BIDIR)

    enc, hidden, cell = encoder_attention_lstm_forward(x, params)
    jax.block_until_ready((enc, hidden, cell))

    # sanity-check against the pure-JAX reference
    enc_r, hid_r, cell_r = encoder_ref(x, params)
    np.testing.assert_allclose(np.asarray(enc), np.asarray(enc_r),
                               rtol=1e-4, atol=1e-4)
    np.testing.assert_allclose(np.asarray(hidden), np.asarray(hid_r),
                               rtol=1e-4, atol=1e-4)
    np.testing.assert_allclose(np.asarray(cell), np.asarray(cell_r),
                               rtol=1e-4, atol=1e-4)

    assert enc.shape == (SEQ, BATCH, HID)
    assert hidden.shape == (NLAYERS * 2, BATCH, HID)
    assert cell.shape == (NLAYERS * 2, BATCH, HID)
    print("KERNEL_OK")
</pallas_src>

<mosaic_0001>
module attributes {stable_mosaic.version = 11 : i64} {
  func.func @_bilstm_layer_kernel(%arg0: memref<8x8x16xf32, #tpu.memory_space<vmem>>, %arg1: memref<2x16x128xf32, #tpu.memory_space<vmem>>, %arg2: memref<2x32x128xf32, #tpu.memory_space<vmem>>, %arg3: memref<2x1x128xf32, #tpu.memory_space<vmem>>, %arg4: memref<8x8x64xf32, #tpu.memory_space<vmem>>, %arg5: memref<2x8x32xf32, #tpu.memory_space<vmem>>, %arg6: memref<2x8x32xf32, #tpu.memory_space<vmem>>, %arg7: memref<8x8x128xf32, #tpu.memory_space<vmem>>, %arg8: memref<8x8x128xf32, #tpu.memory_space<vmem>>) attributes {dimension_semantics = [], scalar_prefetch = 0 : i64, scratch_operands = 2 : i64, tpu.core_type = #tpu.core_type<tc>} {
    %c0 = arith.constant 0 : index
    %c0_0 = arith.constant 0 : index
    %c0_1 = arith.constant 0 : index
    %0 = vector.load %arg0[%c0, %c0_0, %c0_1] : memref<8x8x16xf32, #tpu.memory_space<vmem>>, vector<8x8x16xf32>
    %1 = vector.shape_cast %0 : vector<8x8x16xf32> to vector<64x16xf32>
    %c0_2 = arith.constant 0 : index
    %c0_3 = arith.constant 0 : index
    %c0_4 = arith.constant 0 : index
    %2 = vector.load %arg1[%c0_2, %c0_3, %c0_4] : memref<2x16x128xf32, #tpu.memory_space<vmem>>, vector<1x16x128xf32>
    %3 = vector.shape_cast %2 : vector<1x16x128xf32> to vector<16x128xf32>
    %cst = arith.constant dense<0.000000e+00> : vector<64x128xf32>
    %4 = tpu.matmul %1, %3, %cst {dimension_numbers = #tpu.dot_dimension_numbers<[1], [0], [0], [1], [0, 0, 1, 1], [], []>} : vector<64x16xf32>, vector<16x128xf32>, vector<64x128xf32> -> vector<64x128xf32>
    %c0_5 = arith.constant 0 : index
    %c0_6 = arith.constant 0 : index
    %c0_7 = arith.constant 0 : index
    %5 = vector.load %arg3[%c0_5, %c0_6, %c0_7] : memref<2x1x128xf32, #tpu.memory_space<vmem>>, vector<1x1x128xf32>
    %6 = vector.shape_cast %5 : vector<1x1x128xf32> to vector<1x128xf32>
    %7 = vector.broadcast %6 : vector<1x128xf32> to vector<64x128xf32>
    %8 = arith.addf %4, %7 : vector<64x128xf32>
    %9 = vector.shape_cast %8 : vector<64x128xf32> to vector<8x8x128xf32>
    %c0_8 = arith.constant 0 : index
    %c0_9 = arith.constant 0 : index
    %c0_10 = arith.constant 0 : index
    %10 = vector.load %arg7[%c0_8, %c0_9, %c0_10] : memref<8x8x128xf32, #tpu.memory_space<vmem>>, vector<8x8x128xf32>
    tpu.vector_store %arg7[%c0_8, %c0_9, %c0_10], %9 {strides = array<i32>} : memref<8x8x128xf32, #tpu.memory_space<vmem>>, vector<8x8x128xf32>,
    %c1 = arith.constant 1 : index
    %c0_11 = arith.constant 0 : index
    %c0_12 = arith.constant 0 : index
    %11 = vector.load %arg1[%c1, %c0_11, %c0_12] : memref<2x16x128xf32, #tpu.memory_space<vmem>>, vector<1x16x128xf32>
    %12 = vector.shape_cast %11 : vector<1x16x128xf32> to vector<16x128xf32>
    %cst_13 = arith.constant dense<0.000000e+00> : vector<64x128xf32>
    %13 = tpu.matmul %1, %12, %cst_13 {dimension_numbers = #tpu.dot_dimension_numbers<[1], [0], [0], [1], [0, 0, 1, 1], [], []>} : vector<64x16xf32>, vector<16x128xf32>, vector<64x128xf32> -> vector<64x128xf32>
    %c1_14 = arith.constant 1 : index
    %c0_15 = arith.constant 0 : index
    %c0_16 = arith.constant 0 : index
    %14 = vector.load %arg3[%c1_14, %c0_15, %c0_16] : memref<2x1x128xf32, #tpu.memory_space<vmem>>, vector<1x1x128xf32>
    %15 = vector.shape_cast %14 : vector<1x1x128xf32> to vector<1x128xf32>
    %16 = vector.broadcast %15 : vector<1x128xf32> to vector<64x128xf32>
    %17 = arith.addf %13, %16 : vector<64x128xf32>
    %18 = vector.shape_cast %17 : vector<64x128xf32> to vector<8x8x128xf32>
    %c0_17 = arith.constant 0 : index
    %c0_18 = arith.constant 0 : index
    %c0_19 = arith.constant 0 : index
    %19 = vector.load %arg8[%c0_17, %c0_18, %c0_19] : memref<8x8x128xf32, #tpu.memory_space<vmem>>, vector<8x8x128xf32>
    tpu.vector_store %arg8[%c0_17, %c0_18, %c0_19], %18 {strides = array<i32>} : memref<8x8x128xf32, #tpu.memory_space<vmem>>, vector<8x8x128xf32>,
    %cst_20 = arith.constant 0.000000e+00 : f32
    %20 = vector.broadcast %cst_20 : f32 to vector<8x32xf32>
    %cst_21 = arith.constant 0.000000e+00 : f32
    %21 = vector.broadcast %cst_21 : f32 to vector<8x32xf32>
    %cst_22 = arith.constant 0.000000e+00 : f32
    %22 = vector.broadcast %cst_22 : f32 to vector<8x32xf32>
    %cst_23 = arith.constant 0.000000e+00 : f32
    %23 = vector.broadcast %cst_23 : f32 to vector<8x32xf32>
    %c0_i32 = arith.constant 0 : i32
    %c8_i32 = arith.constant 8 : i32
    %24 = arith.addi %c0_i32, %c8_i32 : i32
    %c1_i32 = arith.constant 1 : i32
    %25:4 = scf.for %arg9 = %c0_i32 to %24 step %c1_i32 iter_args(%arg10 = %20, %arg11 = %21, %arg12 = %22, %arg13 = %23) -> (vector<8x32xf32>, vector<8x32xf32>, vector<8x32xf32>, vector<8x32xf32>)  : i32 {
      %38 = arith.index_cast %arg9 : i32 to index
      %c0_37 = arith.constant 0 : index
      %c0_38 = arith.constant 0 : index
      %39 = vector.load %arg7[%38, %c0_37, %c0_38] : memref<8x8x128xf32, #tpu.memory_space<vmem>>, vector<1x8x128xf32>
      %40 = vector.shape_cast %39 : vector<1x8x128xf32> to vector<8x128xf32>
      %c0_39 = arith.constant 0 : index
      %c0_40 = arith.constant 0 : index
      %c0_41 = arith.constant 0 : index
      %41 = vector.load %arg2[%c0_39, %c0_40, %c0_41] : memref<2x32x128xf32, #tpu.memory_space<vmem>>, vector<1x32x128xf32>
      %42 = vector.shape_cast %41 : vector<1x32x128xf32> to vector<32x128xf32>
      %cst_42 = arith.constant dense<0.000000e+00> : vector<8x128xf32>
      %43 = tpu.matmul %arg10, %42, %cst_42 {dimension_numbers = #tpu.dot_dimension_numbers<[1], [0], [0], [1], [0, 0, 1, 1], [], []>} : vector<8x32xf32>, vector<32x128xf32>, vector<8x128xf32> -> vector<8x128xf32>
      %44 = arith.addf %40, %43 : vector<8x128xf32>
      %45 = vector.extract_strided_slice %44 {offsets = [0, 0], sizes = [8, 96], strides = [1, 1]} : vector<8x128xf32> to vector<8x96xf32>
      %46 = arith.negf %45 : vector<8x96xf32>
      %47 = math.exp %46 : vector<8x96xf32>
      %cst_43 = arith.constant 1.000000e+00 : f32
      %48 = vector.broadcast %cst_43 : f32 to vector<8x96xf32>
      %49 = arith.addf %48, %47 : vector<8x96xf32>
      %50 = arith.divf %48, %49 : vector<8x96xf32>
      %51 = vector.extract_strided_slice %44 {offsets = [0, 96], sizes = [8, 32], strides = [1, 1]} : vector<8x128xf32> to vector<8x32xf32>
      %52 = math.tanh %51 : vector<8x32xf32>
      %53 = vector.extract_strided_slice %50 {offsets = [0, 0], sizes = [8, 32], strides = [1, 1]} : vector<8x96xf32> to vector<8x32xf32>
      %54 = vector.extract_strided_slice %50 {offsets = [0, 32], sizes = [8, 32], strides = [1, 1]} : vector<8x96xf32> to vector<8x32xf32>
      %55 = vector.extract_strided_slice %50 {offsets = [0, 64], sizes = [8, 32], strides = [1, 1]} : vector<8x96xf32> to vector<8x32xf32>
      %56 = arith.mulf %54, %arg11 : vector<8x32xf32>
      %57 = arith.mulf %53, %52 : vector<8x32xf32>
      %58 = arith.addf %56, %57 : vector<8x32xf32>
      %59 = math.tanh %58 : vector<8x32xf32>
      %60 = arith.mulf %55, %59 : vector<8x32xf32>
      %61 = arith.index_cast %arg9 : i32 to index
      %c0_44 = arith.constant 0 : index
      %c0_45 = arith.constant 0 : index
      %62 = vector.load %arg4[%61, %c0_44, %c0_45] : memref<8x8x64xf32, #tpu.memory_space<vmem>>, vector<1x8x32xf32>
      %63 = vector.shape_cast %62 : vector<1x8x32xf32> to vector<8x32xf32>
      %64 = vector.shape_cast %60 : vector<8x32xf32> to vector<1x8x32xf32>
      tpu.vector_store %arg4[%61, %c0_44, %c0_45], %64 {strides = array<i32>} : memref<8x8x64xf32, #tpu.memory_space<vmem>>, vector<1x8x32xf32>,
      %c7_i32 = arith.constant 7 : i32
      %65 = arith.subi %c7_i32, %arg9 : i32
      %66 = arith.index_cast %65 : i32 to index
      %c0_46 = arith.constant 0 : index
      %c0_47 = arith.constant 0 : index
      %67 = vector.load %arg8[%66, %c0_46, %c0_47] : memref<8x8x128xf32, #tpu.memory_space<vmem>>, vector<1x8x128xf32>
      %68 = vector.shape_cast %67 : vector<1x8x128xf32> to vector<8x128xf32>
      %c1_48 = arith.constant 1 : index
      %c0_49 = arith.constant 0 : index
      %c0_50 = arith.constant 0 : index
      %69 = vector.load %arg2[%c1_48, %c0_49, %c0_50] : memref<2x32x128xf32, #tpu.memory_space<vmem>>, vector<1x32x128xf32>
      %70 = vector.shape_cast %69 : vector<1x32x128xf32> to vector<32x128xf32>
      %cst_51 = arith.constant dense<0.000000e+00> : vector<8x128xf32>
      %71 = tpu.matmul %arg12, %70, %cst_51 {dimension_numbers = #tpu.dot_dimension_numbers<[1], [0], [0], [1], [0, 0, 1, 1], [], []>} : vector<8x32xf32>, vector<32x128xf32>, vector<8x128xf32> -> vector<8x128xf32>
      %72 = arith.addf %68, %71 : vector<8x128xf32>
      %73 = vector.extract_strided_slice %72 {offsets = [0, 0], sizes = [8, 96], strides = [1, 1]} : vector<8x128xf32> to vector<8x96xf32>
      %74 = arith.negf %73 : vector<8x96xf32>
      %75 = math.exp %74 : vector<8x96xf32>
      %cst_52 = arith.constant 1.000000e+00 : f32
      %76 = vector.broadcast %cst_52 : f32 to vector<8x96xf32>
      %77 = arith.addf %76, %75 : vector<8x96xf32>
      %78 = arith.divf %76, %77 : vector<8x96xf32>
      %79 = vector.extract_strided_slice %72 {offsets = [0, 96], sizes = [8, 32], strides = [1, 1]} : vector<8x128xf32> to vector<8x32xf32>
      %80 = math.tanh %79 : vector<8x32xf32>
      %81 = vector.extract_strided_slice %78 {offsets = [0, 0], sizes = [8, 32], strides = [1, 1]} : vector<8x96xf32> to vector<8x32xf32>
      %82 = vector.extract_strided_slice %78 {offsets = [0, 32], sizes = [8, 32], strides = [1, 1]} : vector<8x96xf32> to vector<8x32xf32>
      %83 = vector.extract_strided_slice %78 {offsets = [0, 64], sizes = [8, 32], strides = [1, 1]} : vector<8x96xf32> to vector<8x32xf32>
      %84 = arith.mulf %82, %arg13 : vector<8x32xf32>
      %85 = arith.mulf %81, %80 : vector<8x32xf32>
      %86 = arith.addf %84, %85 : vector<8x32xf32>
      %87 = math.tanh %86 : vector<8x32xf32>
      %88 = arith.mulf %83, %87 : vector<8x32xf32>
      %89 = arith.index_cast %65 : i32 to index
      %c0_53 = arith.constant 0 : index
      %c32 = arith.constant 32 : index
      %90 = vector.load %arg4[%89, %c0_53, %c32] : memref<8x8x64xf32, #tpu.memory_space<vmem>>, vector<1x8x32xf32>
      %91 = vector.shape_cast %90 : vector<1x8x32xf32> to vector<8x32xf32>
      %92 = vector.shape_cast %88 : vector<8x32xf32> to vector<1x8x32xf32>
      tpu.vector_store %arg4[%89, %c0_53, %c32], %92 {strides = array<i32>} : memref<8x8x64xf32, #tpu.memory_space<vmem>>, vector<1x8x32xf32>,
      scf.yield %60, %58, %88, %86 : vector<8x32xf32>, vector<8x32xf32>, vector<8x32xf32>, vector<8x32xf32>
    }
    %c8_i32_24 = arith.constant 8 : i32
    %c0_25 = arith.constant 0 : index
    %c0_26 = arith.constant 0 : index
    %c0_27 = arith.constant 0 : index
    %26 = vector.load %arg5[%c0_25, %c0_26, %c0_27] : memref<2x8x32xf32, #tpu.memory_space<vmem>>, vector<1x8x32xf32>
    %27 = vector.shape_cast %26 : vector<1x8x32xf32> to vector<8x32xf32>
    %28 = vector.shape_cast %25#0 : vector<8x32xf32> to vector<1x8x32xf32>
    tpu.vector_store %arg5[%c0_25, %c0_26, %c0_27], %28 {strides = array<i32>} : memref<2x8x32xf32, #tpu.memory_space<vmem>>, vector<1x8x32xf32>,
    %c0_28 = arith.constant 0 : index
    %c0_29 = arith.constant 0 : index
    %c0_30 = arith.constant 0 : index
    %29 = vector.load %arg6[%c0_28, %c0_29, %c0_30] : memref<2x8x32xf32, #tpu.memory_space<vmem>>, vector<1x8x32xf32>
    %30 = vector.shape_cast %29 : vector<1x8x32xf32> to vector<8x32xf32>
    %31 = vector.shape_cast %25#1 : vector<8x32xf32> to vector<1x8x32xf32>
    tpu.vector_store %arg6[%c0_28, %c0_29, %c0_30], %31 {strides = array<i32>} : memref<2x8x32xf32, #tpu.memory_space<vmem>>, vector<1x8x32xf32>,
    %c1_31 = arith.constant 1 : index
    %c0_32 = arith.constant 0 : index
    %c0_33 = arith.constant 0 : index
    %32 = vector.load %arg5[%c1_31, %c0_32, %c0_33] : memref<2x8x32xf32, #tpu.memory_space<vmem>>, vector<1x8x32xf32>
    %33 = vector.shape_cast %32 : vector<1x8x32xf32> to vector<8x32xf32>
    %34 = vector.shape_cast %25#2 : vector<8x32xf32> to vector<1x8x32xf32>
    tpu.vector_store %arg5[%c1_31, %c0_32, %c0_33], %34 {strides = array<i32>} : memref<2x8x32xf32, #tpu.memory_space<vmem>>, vector<1x8x32xf32>,
    %c1_34 = arith.constant 1 : index
    %c0_35 = arith.constant 0 : index
    %c0_36 = arith.constant 0 : index
    %35 = vector.load %arg6[%c1_34, %c0_35, %c0_36] : memref<2x8x32xf32, #tpu.memory_space<vmem>>, vector<1x8x32xf32>
    %36 = vector.shape_cast %35 : vector<1x8x32xf32> to vector<8x32xf32>
    %37 = vector.shape_cast %25#3 : vector<8x32xf32> to vector<1x8x32xf32>
    tpu.vector_store %arg6[%c1_34, %c0_35, %c0_36], %37 {strides = array<i32>} : memref<2x8x32xf32, #tpu.memory_space<vmem>>, vector<1x8x32xf32>,
    return
  }
}

</mosaic_0001>

<bundles_post_ra>
// kernel: tpu_custom_call.1
= control target key start
LH: loop header
LB: loop body
LE: loop exit
PB: predicated region body
PF: predicated region fallthrough
CT: control target
= control target key end

     0   :  { %12 = vsyncpa [#allocation5], 0  ;;  %s1297_s0 = inlined_call_operand.hbm [shape: f32[8,8,16], index: 0, kind: input, shape index: {}]   ;;  %s1298_s1 = inlined_call_operand.hbm [shape: f32[2,16,128], index: 1, kind: input, shape index: {}]   ;;  %s1299_s2 = inlined_call_operand.hbm [shape: f32[2,32,128], index: 2, kind: input, shape index: {}]   ;;  %s1300_s3 = inlined_call_operand.vmem [shape: f32[2,1,128], index: 3, kind: input, shape index: {}]   ;;  %s1301_s4 = inlined_call_operand.hbm [shape: f32[8,8,64], index: 4, kind: output, shape index: {0}]   ;;  %s1302_s5 = inlined_call_operand.hbm [shape: f32[2,8,32], index: 5, kind: output, shape index: {1}]   ;;  %s1303_s6 = inlined_call_operand.hbm [shape: f32[2,8,32], index: 6, kind: output, shape index: {2}]  }
   0x1   :  { %13 = vsyncpa [#allocation8], 0 }
   0x2   :  { %14 = vsyncpa [#allocation6], 0 }
   0x3   :  { %15 = vsyncpa [#allocation12], 0  ;;  %s1060_s21 = smov [#allocation7]   ;;  %s1061_s23 = smov [#allocation4]  }
   0x4   :  { %s33_s22 = sshll.u32 %s1060_s21, 4  ;;  %s21_s24 = sshll.u32 %s1061_s23, 4  ;;  %s34_s22 = int_to_ptr.vmem [resolvable:$true] %s33_s22  ;;  %s1111_s24 = int_to_ptr.vmem [resolvable:$true] %s21_s24 }
   0x5   :  { %s880_s27 = scalar_lea.hbm %s1298_s1, 512 }
   0x6   :  { %p881_p0 = scmp.ne.s32.totalorder %s1298_s1, %s880_s27  ;;  %p884_p1 = scmp.lt.u32.totalorder %s880_s27, %s1298_s1 }
   0x8   :  { %p886_p2 = pnand %p884_p1, %p881_p0 }
   0xa   :  { %889 = shalt.err (!%p886_p2)
}
   0xb   :  { %s890_s8 = scalar_lea.vmem %s34_s22, 512  ;;  %p895_p4 = scmp.lt.s32.totalorder %s34_s22, %s34_s22 }
   0xc   :  { %p891_p3 = scmp.ne.s32.totalorder %s34_s22, %s890_s8  ;;  %p896_p5 = scmp.lt.s32.totalorder %s890_s8, %s890_s8 }
   0xe   :  { %p897_p6 = por %p896_p5, %p895_p4 }
  0x10   :  { %p898_p7 = pnand %p897_p6, %p891_p3 }
  0x12   :  { %901 = shalt.err (!%p898_p7)
}
  0x13   :  { %s1062_s9 = smov 128   ;;  %s1063_s10 = smov 8  }
  0x14   :  { %39 = dma.hbm_to_vmem [thread:$0]  %s1298_s1, 512, %s34_s22, [#allocation8], %s1062_s9, %s1062_s9, %s1063_s10  }
  0x15   :  { %s902_s15 = scalar_lea.hbm %s1297_s0, 1024 }
  0x16   :  { %p903_p8 = scmp.ne.s32.totalorder %s1297_s0, %s902_s15  ;;  %p906_p9 = scmp.lt.u32.totalorder %s902_s15, %s1297_s0 }
  0x18   :  { %p908_p10 = pnand %p906_p9, %p903_p8 }
  0x1a   :  { %911 = shalt.err (!%p908_p10)
}
  0x1b   :  { %s912_s20 = scalar_lea.vmem %s1111_s24, 1024  ;;  %p917_p12 = scmp.lt.s32.totalorder %s1111_s24, %s1111_s24 }
  0x1c   :  { %p913_p11 = scmp.ne.s32.totalorder %s1111_s24, %s912_s20  ;;  %p918_p13 = scmp.lt.s32.totalorder %s912_s20, %s912_s20 }
  0x1e   :  { %p919_p0 = por %p918_p13, %p917_p12 }
  0x20   :  { %p920_p1 = pnand %p919_p0, %p913_p11 }
  0x22   :  { %923 = shalt.err (!%p920_p1)
}
  0x23   :  { %27 = dma.hbm_to_vmem [thread:$0]  %s1297_s0, 1024, %s1111_s24, [#allocation5], %s1062_s9, %s1062_s9, %s1063_s10  }
  0x24   :  { %s1064_s22 = smov [#allocation9]   ;;  %s924_s27 = scalar_lea.hbm %s1299_s2, 1024 }
  0x25   :  { %s45_s23 = sshll.u32 %s1064_s22, 4  ;;  %p925_p2 = scmp.ne.s32.totalorder %s1299_s2, %s924_s27  ;;  %s46_s23 = int_to_ptr.vmem [resolvable:$true] %s45_s23 }
  0x26   :  { %p928_p3 = scmp.lt.u32.totalorder %s924_s27, %s1299_s2 }
  0x28   :  { %p930_p4 = pnand %p928_p3, %p925_p2 }
  0x2a   :  { %933 = shalt.err (!%p930_p4)
}
  0x2b   :  { %s934_s8 = scalar_lea.vmem %s46_s23, 1024  ;;  %p939_p6 = scmp.lt.s32.totalorder %s46_s23, %s46_s23 }
  0x2c   :  { %p935_p5 = scmp.ne.s32.totalorder %s46_s23, %s934_s8  ;;  %p940_p7 = scmp.lt.s32.totalorder %s934_s8, %s934_s8 }
  0x2e   :  { %p941_p8 = por %p940_p7, %p939_p6 }
  0x30   :  { %p942_p9 = pnand %p941_p8, %p935_p5 }
  0x32   :  { %945 = shalt.err (!%p942_p9)
}
  0x33   :  { %51 = dma.hbm_to_vmem [thread:$0]  %s1299_s2, 1024, %s46_s23, [#allocation8], %s1062_s9, %s1062_s9, %s1063_s10  }
  0x34   :  { %1032 = dma.done.wait [#allocation5], 1024  }
  0x35   :  { %1033 = vsyncadd [#allocation5], 4294966272 }
  0x36   :  { %1034 = dma.done.wait [#allocation8], 1536  }
  0x37   :  { %1035 = vsyncadd [#allocation8], 4294965760  ;;  %vm80_vm0 = vcmask 130048   ;;  %v71_v0 = vld [vmem:[#allocation7] sm:$0xff]  ;;  %v72_v1 = vld [vmem:[#allocation7 + $0x8] sm:$0xff]  ;;  %v1185_v48 = vmov 0.0  }
  0x38   :  { %v219_v2 = vld [vmem:[#allocation7 + $0x10] sm:$0xff]  ;;  %v788_v3 = vpack.c.bf16 %v72_v1, %v71_v0  ;;  %v220_v4 = vld [vmem:[#allocation7 + $0x18] sm:$0xff]  ;;  %v63_v5 = vld [vmem:[#allocation4] sm:$0xff]  ;;  %v1187_v49 = vmov 0.0   ;;  %v1189_v50 = vmov 0.0   ;;  %v1191_v51 = vmov 0.0  }
  0x39   :  { %v792_v6 = vpack.c.bf16 %v220_v4, %v219_v2  ;;  %738 = vmatprep.mubr.msk.f32.mxu0 %vm80_vm0, %v63_v5  ;;  %754 = vmatprep.mubr.msk.f32.mxu1 %vm80_vm0, %v63_v5  ;;  %v64_v7 = vld [vmem:[#allocation4 + $0x8] sm:$0xff]  ;;  %v65_v8 = vld [vmem:[#allocation4 + $0x10] sm:$0xff]  ;;  %v66_v9 = vld [vmem:[#allocation4 + $0x18] sm:$0xff] }
  0x3a   :  { %789 = vmatprep.subr.bf16.mxu0 %v788_v3  ;;  %v67_v10 = vld [vmem:[#allocation4 + $0x20] sm:$0xff]  ;;  %v68_v11 = vld [vmem:[#allocation4 + $0x28] sm:$0xff]  ;;  %v69_v12 = vld [vmem:[#allocation4 + $0x30] sm:$0xff] }
  0x3b   :  { %793 = vmatprep.subr.bf16.mxu1 %v792_v6  ;;  %791 = vmatpush3.bf16.msra.mxu0 %v788_v3  ;;  %v70_v13 = vld [vmem:[#allocation4 + $0x38] sm:$0xff]  ;;  %v679_v14 = vld [vmem:[%s1300_s3] ss:$0 sm:$0xff]  ;;  %v689_v15 = vld [vmem:[%s1300_s3 + $0x1] ss:$0 sm:$0xff]  ;;  %s1193_s3 = smov 0  }
  0x3c   :  { %795 = vmatpush3.bf16.msra.mxu1 %v792_v6 }
  0x3e   :  { %739 = vmatmul.mubr.msk.f32.vlgmr.msra.gmra.mrb[0].mxu0 %vm80_vm0, %v64_v7 }
  0x3f   :  { %755 = vmatmul.mubr.msk.f32.vlgmr.msra.gmra.mrb[0].mxu1 %vm80_vm0, %v64_v7  ;;  %741 = vmatprep.mubr.msk.f32.mxu0 %vm80_vm0, %v65_v8 }
  0x40   :  { %757 = vmatprep.mubr.msk.f32.mxu1 %vm80_vm0, %v65_v8 }
  0x42   :  { %742 = vmatmul.mubr.msk.f32.gmra.mrb[2].mxu0 %vm80_vm0, %v66_v9 }
  0x43   :  { %758 = vmatmul.mubr.msk.f32.gmra.mrb[2].mxu1 %vm80_vm0, %v66_v9  ;;  %744 = vmatprep.mubr.msk.f32.mxu0 %vm80_vm0, %v67_v10 }
  0x44   :  { %760 = vmatprep.mubr.msk.f32.mxu1 %vm80_vm0, %v67_v10 }
  0x46   :  { %745 = vmatmul.mubr.msk.f32.gmra.mrb[4].mxu0 %vm80_vm0, %v68_v11 }
  0x47   :  { %761 = vmatmul.mubr.msk.f32.gmra.mrb[4].mxu1 %vm80_vm0, %v68_v11  ;;  %747 = vmatprep.mubr.msk.f32.mxu0 %vm80_vm0, %v69_v12 }
  0x48   :  { %763 = vmatprep.mubr.msk.f32.mxu1 %vm80_vm0, %v69_v12 }
  0x4a   :  { %748 = vmatmul.mubr.msk.f32.gmra.mrb[6].mxu0 %vm80_vm0, %v70_v13 }
  0x4b   :  { %764 = vmatmul.mubr.msk.f32.gmra.mrb[6].mxu1 %vm80_vm0, %v70_v13 }
 0x111   :  { %v740_v16 = vpop.f32.mrb[0].mxu0 }
 0x112   :  { %v177_v17 = vadd.f32 %v740_v16, %v679_v14  ;;  %v756_v18 = vpop.f32.mrb[0].mxu1  ;;  %v171_v19 = vpop.f32.mrb[1].mxu0 }
 0x113   :  { %v301_v20 = vadd.f32 %v756_v18, %v689_v15  ;;  %v172_v21 = vadd.f32 %v679_v14, %v171_v19  ;;  %v295_v22 = vpop.f32.mrb[1].mxu1 }
 0x114   :  { %211 = vst [vmem:[#allocation2 + $0x8] sm:$0xff] %v177_v17  ;;  %v296_v23 = vadd.f32 %v689_v15, %v295_v22 }
 0x115   :  { %335 = vst [vmem:[#allocation3 + $0x8] sm:$0xff] %v301_v20  ;;  %210 = vst [vmem:[#allocation2] sm:$0xff] %v172_v21  ;;  %v743_v24 = vpop.f32.mrb[2].mxu0 }
 0x116   :  { %334 = vst [vmem:[#allocation3] sm:$0xff] %v296_v23  ;;  %v187_v25 = vadd.f32 %v743_v24, %v679_v14  ;;  %v759_v26 = vpop.f32.mrb[2].mxu1  ;;  %v181_v27 = vpop.f32.mrb[3].mxu0 }
 0x117   :  { %v311_v28 = vadd.f32 %v759_v26, %v689_v15  ;;  %v182_v29 = vadd.f32 %v679_v14, %v181_v27  ;;  %v305_v30 = vpop.f32.mrb[3].mxu1 }
 0x118   :  { %213 = vst [vmem:[#allocation2 + $0x18] sm:$0xff] %v187_v25  ;;  %v306_v31 = vadd.f32 %v689_v15, %v305_v30 }
 0x119   :  { %337 = vst [vmem:[#allocation3 + $0x18] sm:$0xff] %v311_v28  ;;  %212 = vst [vmem:[#allocation2 + $0x10] sm:$0xff] %v182_v29  ;;  %v746_v32 = vpop.f32.mrb[4].mxu0 }
 0x11a   :  { %336 = vst [vmem:[#allocation3 + $0x10] sm:$0xff] %v306_v31  ;;  %v197_v33 = vadd.f32 %v746_v32, %v679_v14  ;;  %v762_v34 = vpop.f32.mrb[4].mxu1  ;;  %v191_v35 = vpop.f32.mrb[5].mxu0 }
 0x11b   :  { %v321_v36 = vadd.f32 %v762_v34, %v689_v15  ;;  %v192_v37 = vadd.f32 %v679_v14, %v191_v35  ;;  %v315_v38 = vpop.f32.mrb[5].mxu1 }
 0x11c   :  { %215 = vst [vmem:[#allocation2 + $0x28] sm:$0xff] %v197_v33  ;;  %v316_v39 = vadd.f32 %v689_v15, %v315_v38 }
 0x11d   :  { %339 = vst [vmem:[#allocation3 + $0x28] sm:$0xff] %v321_v36  ;;  %214 = vst [vmem:[#allocation2 + $0x20] sm:$0xff] %v192_v37  ;;  %v749_v40 = vpop.f32.mrb[6].mxu0 }
 0x11e   :  { %338 = vst [vmem:[#allocation3 + $0x20] sm:$0xff] %v316_v39  ;;  %v207_v41 = vadd.f32 %v749_v40, %v679_v14  ;;  %v765_v42 = vpop.f32.mrb[6].mxu1  ;;  %v201_v43 = vpop.f32.mrb[7].mxu0 }
 0x11f   :  { %v331_v44 = vadd.f32 %v765_v42, %v689_v15  ;;  %v202_v45 = vadd.f32 %v679_v14, %v201_v43  ;;  %v325_v46 = vpop.f32.mrb[7].mxu1 }
 0x120   :  { %217 = vst [vmem:[#allocation2 + $0x38] sm:$0xff] %v207_v41  ;;  %v326_v47 = vadd.f32 %v689_v15, %v325_v46 }
 0x121   :  { %341 = vst [vmem:[#allocation3 + $0x38] sm:$0xff] %v331_v44  ;;  %216 = vst [vmem:[#allocation2 + $0x30] sm:$0xff] %v202_v45 }
 0x122   :  { %340 = vst [vmem:[#allocation3 + $0x30] sm:$0xff] %v326_v47 }
 0x123 LB: > { %v355_v52 = vld [vmem:[#allocation9] sm:$0xff]  ;;  %v356_v53 = vld [vmem:[#allocation9 + $0x8] sm:$0xff]  ;;  %v357_v54 = vld [vmem:[#allocation9 + $0x10] sm:$0xff]  ;;  %v1065_v55 = vmov 0.0|0.0   ;;  %s1066_s14 = smov 64   ;;  %vm1067_vm1 = vmmov 0   ;;  %s1058_s3 = sphi %s1193_s3, %s347_s3   ;;  %v1054_v51 = vphi %v1191_v51, %v1307_v51   ;;  %v1050_v50 = vphi %v1189_v50, %v1306_v50   ;;  %v1046_v49 = vphi %v1187_v49, %v1305_v49   ;;  %v1042_v48 = vphi %v1185_v48, %v1304_v48  }
 0x124   : > { %796 = vmatprep.subr.bf16.mxu0 %v1065_v55  ;;  %v797_v56 = vpack.c.bf16 %v356_v53, %v355_v52  ;;  %802 = vmatprep.subr.bf16.mxu1 %v1065_v55  ;;  %v358_v57 = vld [vmem:[#allocation9 + $0x18] sm:$0xff]  ;;  %v471_v58 = vld [vmem:[#allocation9 + $0x20] sm:$0xff]  ;;  %v472_v59 = vld [vmem:[#allocation9 + $0x28] sm:$0xff]  ;;  %v1068_v61 = vmov 0.0   ;;  %vm362_vm2 = vcmask 261120   ;;  %s698_s15 = sshll.u32 %s1058_s3, 3 }
 0x125   : > { %360 = vrot.lane.b32.xlu0 %v1054_v51, %s1066_s14  ;;  %v803_v60 = vpack.c.bf16 %v472_v59, %v471_v58  ;;  %774 = vmatprep.mubr.msk.f32.mxu0 %vm1067_vm1, %v1068_v61  ;;  %v473_v62 = vld [vmem:[#allocation9 + $0x30] sm:$0xff]  ;;  %v474_v63 = vld [vmem:[#allocation9 + $0x38] sm:$0xff]  ;;  %v800_v0 = vpack.c.bf16 %v358_v57, %v357_v54  ;;  %s466_s16 = ssub.s32 7, %s1058_s3  ;;  %s353_s18 = scalar_lea.vmem [#allocation2], %s698_s15  ;;  %vm580_vm3 = vcmask 523520  }
 0x126   : > { %798 = vmatpush3.bf16.msra.mxu0 %v797_v56  ;;  %785 = vmatprep.mubr.msk.f32.mxu1 %vm1067_vm1, %v1068_v61  ;;  %v806_v1 = vpack.c.bf16 %v474_v63, %v473_v62  ;;  %s1212_s17 = sshll.u32 %s466_s16, 3  ;;  %s1069_s20 = smov 32  }
 0x127   : > { %799 = vmatprep.subr.bf16.mxu0 %v1065_v55  ;;  %804 = vmatpush3.bf16.msra.mxu1 %v803_v60  ;;  %s468_s19 = scalar_lea.vmem [#allocation3], %s1212_s17  ;;  %s1070_s1 = smov 96  }
 0x128   : > { %805 = vmatprep.subr.bf16.mxu1 %v1065_v55  ;;  %v354_v4 = vld [vmem:[%s353_s18] sm:$0xff]  ;;  %s464_s21 = scalar_lea.vmem [#allocation10], %s698_s15  ;;  %s579_s22 = scalar_lea.vmem [#allocation10], %s1212_s17 }
 0x129   : > { %476 = vrot.lane.b32.xlu0 %v1046_v49, %s1066_s14  ;;  %v469_v8 = vld [vmem:[%s468_s19] sm:$0xff]  ;;  %s347_s3 = sadd.s32 1, %s1058_s3  }
 0x12a   : > { %801 = vmatpush3.bf16.msra.mxu0 %v800_v0  ;;  %p344_p10 = scmp.ge.s32.totalorder %s347_s3, 8  }
 0x12b   : > { %807 = vmatpush3.bf16.msra.mxu1 %v806_v1  ;;  %s1071_s23 = smov (%p344_p10), 64   ;;  %s1072_s25 = smov (%p344_p10), 96  }
 0x12c   :  { %s1073_s26 = smov (%p344_p10), [#allocation10]  }
 0x12d   :  { %s610_s27 = sshll.u32 (%p344_p10), %s1073_s26, 4  ;;  %s611_s27 = int_to_ptr.vmem [resolvable:$true] %s610_s27 }
 0x12e   :  { %s946_s28 = scalar_lea.vmem (%p344_p10), %s611_s27, 1024  ;;  %p951_p12 = scmp.lt.s32.totalorder (%p344_p10), %s611_s27, %s611_s27 }
 0x12f   :  { %p947_p11 = scmp.ne.s32.totalorder (%p344_p10), %s611_s27, %s946_s28  ;;  %p952_p13 = scmp.lt.s32.totalorder (%p344_p10), %s946_s28, %s946_s28 }
 0x131   :  { %p953_p0 = por (%p344_p10), %p952_p13, %p951_p12 }
 0x133   :  { %p954_p1 = pnand (%p344_p10), %p953_p0, %p947_p11 }
 0x197   : > { %v361_v2 = vpop.permute.xlu0 %360 }
 0x198   : > { %775 = vmatmul.mubr.msk.f32.vlgmr.msra.gmra.mrb[0].mxu0 %vm362_vm2, %v361_v2 }
 0x19b   : > { %v477_v3 = vpop.permute.xlu0 %476 }
 0x19c   : > { %786 = vmatmul.mubr.msk.f32.vlgmr.msra.gmra.mrb[0].mxu1 %vm362_vm2, %v477_v3 }
 0x26b   : > { %v431_v5 = vpop.f32.mrb[0].mxu0 }
 0x26c   : > { %v435_v6 = vadd.f32 %v431_v5, %v354_v4  ;;  %v776_v7 = vpop.f32.mrb[1].mxu0 }
 0x26e   : > { %864 = vtanh.f32 %v435_v6  ;;  %v700_v14 = vmul.f32 -1.442695, %v435_v6 }
 0x26f   : > { %v546_v9 = vpop.f32.mrb[0].mxu1 }
 0x270   : > { %v550_v10 = vadd.f32 %v546_v9, %v469_v8  ;;  %v787_v11 = vpop.f32.mrb[1].mxu1 }
 0x272   : > { %866 = vtanh.f32 %v550_v10  ;;  %v703_v15 = vmul.f32 -1.442695, %v550_v10 }
 0x273   : > { %868 = vpow2.f32 %v700_v14 }
 0x274   : > { %870 = vpow2.f32 %v703_v15 }
 0x278   : > { %v865_v12 = vpop.eup %864 }
 0x279   : > { %445 = vrot.lane.b32.xlu1 %v865_v12, %s1069_s20 }
 0x27c   : > { %v867_v13 = vpop.eup %866 }
 0x27d   : > { %560 = vrot.lane.b32.xlu1 %v867_v13, %s1069_s20  ;;  %v869_v16 = vpop.eup %868 }
 0x27e   : > { %v439_v17 = vadd.f32 1.0, %v869_v16  ;;  %v871_v18 = vpop.eup %870 }
 0x27f   : > { %v554_v19 = vadd.f32 1.0, %v871_v18 }
 0x280   : > { %872 = vrcp.f32 %v439_v17 }
 0x281   : > { %874 = vrcp.f32 %v554_v19 }
 0x28a   : > { %v873_v20 = vpop.eup %872 }
 0x28b   : > { %v875_v23 = vpop.eup %874  ;;  %v443_v26 = vmul.f32 %v1050_v50, %v873_v20 }
 0x28c   : > { %v558_v29 = vmul.f32 %v1042_v48, %v875_v23 }
 0x2eb   : > { %v446_v21 = vpop.permute.xlu1 %445 }
 0x2ec   : > { %v448_v22 = vmul.f32 %v873_v20, %v446_v21 }
 0x2ee   : > { %450 = vrot.lane.b32.xlu0 %v448_v22, %s1069_s20 }
 0x2ef   : > { %v561_v24 = vpop.permute.xlu1 %560 }
 0x2f0   : > { %v563_v25 = vmul.f32 %v875_v23, %v561_v24 }
 0x2f2   : > { %565 = vrot.lane.b32.xlu1 %v563_v25, %s1069_s20 }
 0x360   : > { %v451_v27 = vpop.permute.xlu0 %450 }
 0x361   : > { %v453_v28 = vadd.f32 %v451_v27, %v443_v26  }
 0x363   : > { %876 = vtanh.f32 %v453_v28  ;;  %v1306_v50 = vmov %v453_v28 }
 0x364   : > { %v566_v30 = vpop.permute.xlu1 %565 }
 0x365   : > { %v568_v31 = vadd.f32 %v566_v30, %v558_v29  }
 0x367   : > { %878 = vtanh.f32 %v568_v31  ;;  %v1304_v48 = vmov %v568_v31 }
 0x36d   : > { %v877_v32 = vpop.eup %876 }
 0x36e   : > { %456 = vrot.lane.b32.xlu0 %v877_v32, %s1069_s20 }
 0x371   : > { %v879_v33 = vpop.eup %878 }
 0x372   : > { %571 = vrot.lane.b32.xlu1 %v879_v33, %s1069_s20 }
 0x3e0   : > { %v457_v34 = vpop.permute.xlu0 %456 }
 0x3e1   : > { %v459_v35 = vmul.f32 %v873_v20, %v457_v34  }
 0x3e3   : > { %461 = vrot.lane.b32.xlu0 %v459_v35, %s1066_s14  ;;  %v1307_v51 = vmov %v459_v35 }
 0x3e4   : > { %v572_v36 = vpop.permute.xlu1 %571 }
 0x3e5   : > { %v574_v37 = vmul.f32 %v875_v23, %v572_v36  }
 0x3e7   : > { %576 = vrot.lane.b32.xlu1 %v574_v37, %s1070_s1  ;;  %v1305_v49 = vmov %v574_v37  ;;  %583 = vrot.lane.b32.xlu0 (%p344_p10), %v459_v35, %s1071_s23 }
 0x3eb   :  { %589 = vrot.lane.b32.xlu1 (%p344_p10), %v453_v28, %s1072_s25 }
 0x454   :  { %346 = sbr.rel (!%p344_p10) target bundleno = 291 (0x123), region = 80 }
 0x455   : > { %v462_v38 = vpop.permute.xlu0 %461 }
 0x456   : > { %465 = vst.msk [vmem:[%s464_s21] sm:$0xff] %vm362_vm2, %v462_v38 }
 0x459   : > { %v577_v39 = vpop.permute.xlu1 %576 }
 0x45a   : > { %581 = vst.msk [vmem:[%s579_s22] sm:$0xff] %vm580_vm3, %v577_v39 }
 0x45b   :  { %957 = shalt.err (!%p954_p1)
}
 0x45c   :  { %s958_s7 = scalar_lea.hbm %s1301_s4, 1024 }
 0x45d   :  { %p959_p2 = scmp.ne.s32.totalorder %s1301_s4, %s958_s7  ;;  %p962_p3 = scmp.lt.u32.totalorder %s958_s7, %s1301_s4 }
 0x45f   :  { %p964_p4 = pnand %p962_p3, %p959_p2 }
 0x461   :  { %967 = shalt.err (!%p964_p4)
}
 0x462   :  { %616 = dma.vmem_to_hbm [thread:$0]  %s611_s27, 1024, %s1301_s4, [#allocation6], %s1062_s9, %s1062_s9, %s1063_s10   ;;  %v584_v40 = vpop.permute.xlu0 %583  ;;  %v590_v41 = vpop.permute.xlu1 %589 }
 0x463   :  { %594 = vrot.lane.b32.xlu0 %v574_v37, %s1071_s23  ;;  %600 = vrot.lane.b32.xlu1 %v568_v31, %s1072_s25  ;;  %s1074_s13 = smov [#allocation11]   ;;  %587 = vst.msk [vmem:[#allocation11] sm:$0xff] %vm362_vm2, %v584_v40  ;;  %592 = vst.msk [vmem:[#allocation13] sm:$0xff] %vm362_vm2, %v590_v41  ;;  %s1075_s14 = smov [#allocation13]  }
 0x464   :  { %s622_s3 = sshll.u32 %s1074_s13, 4  ;;  %s634_s15 = sshll.u32 %s1075_s14, 4  ;;  %s623_s3 = int_to_ptr.vmem [resolvable:$true] %s622_s3  ;;  %s1258_s15 = int_to_ptr.vmem [resolvable:$true] %s634_s15 }
 0x465   :  { %s968_s4 = scalar_lea.vmem %s623_s3, 256  ;;  %p973_p6 = scmp.lt.s32.totalorder %s623_s3, %s623_s3 }
 0x466   :  { %p969_p5 = scmp.ne.s32.totalorder %s623_s3, %s968_s4  ;;  %p974_p7 = scmp.lt.s32.totalorder %s968_s4, %s968_s4 }
 0x468   :  { %p975_p8 = por %p974_p7, %p973_p6 }
 0x46a   :  { %p976_p9 = pnand %p975_p8, %p969_p5 }
 0x4d5   :  { %v595_v42 = vpop.permute.xlu0 %594  ;;  %v601_v43 = vpop.permute.xlu1 %600 }
 0x4d6   :  { %598 = vst.msk [vmem:[#allocation11 + $0x8] sm:$0xff] %vm362_vm2, %v595_v42  ;;  %604 = vst.msk [vmem:[#allocation13 + $0x8] sm:$0xff] %vm362_vm2, %v601_v43 }
 0x4d7   :  { %979 = shalt.err (!%p976_p9)
}
 0x4d8   :  { %s980_s18 = scalar_lea.hbm %s1302_s5, 256 }
 0x4d9   :  { %p981_p10 = scmp.ne.s32.totalorder %s1302_s5, %s980_s18  ;;  %p984_p11 = scmp.lt.u32.totalorder %s980_s18, %s1302_s5 }
 0x4db   :  { %p986_p12 = pnand %p984_p11, %p981_p10 }
 0x4dd   :  { %989 = shalt.err (!%p986_p12)
}
 0x4de   :  { %628 = dma.vmem_to_hbm [thread:$0]  %s623_s3, 256, %s1302_s5, [#allocation12], %s1062_s9, %s1062_s9, %s1063_s10  }
 0x4df   :  { %s990_s25 = scalar_lea.vmem %s1258_s15, 256  ;;  %p995_p0 = scmp.lt.s32.totalorder %s1258_s15, %s1258_s15 }
 0x4e0   :  { %p991_p13 = scmp.ne.s32.totalorder %s1258_s15, %s990_s25  ;;  %p996_p1 = scmp.lt.s32.totalorder %s990_s25, %s990_s25 }
 0x4e2   :  { %p997_p2 = por %p996_p1, %p995_p0 }
 0x4e4   :  { %p998_p3 = pnand %p997_p2, %p991_p13 }
 0x4e6   :  { %1001 = shalt.err (!%p998_p3)
}
 0x4e7   :  { %s1002_s28 = scalar_lea.hbm %s1303_s6, 256 }
 0x4e8   :  { %p1003_p4 = scmp.ne.s32.totalorder %s1303_s6, %s1002_s28  ;;  %p1006_p5 = scmp.lt.u32.totalorder %s1002_s28, %s1303_s6 }
 0x4ea   :  { %p1008_p6 = pnand %p1006_p5, %p1003_p4 }
 0x4ec   :  { %1011 = shalt.err (!%p1008_p6)
}
 0x4ed   :  { %640 = dma.vmem_to_hbm [thread:$0]  %s1258_s15, 256, %s1303_s6, [#allocation12], %s1062_s9, %s1062_s9, %s1063_s10  }
 0x4ee   :  { %1036 = dma.done.wait [#allocation6], 1024  }
 0x4ef   :  { %1037 = vsyncadd [#allocation6], 4294966272 }
 0x4f0   :  { %1038 = dma.done.wait [#allocation12], 512  }
 0x4f1   :  { %1039 = vsyncadd [#allocation12], 4294966784 }
 0x4f2   :  { %650 = vsyncpa [#allocation5], 1 }
 0x4f3   :  { %651 = vsyncpa [#allocation8], 1 }
 0x4f4   :  { %652 = vsyncpa [#allocation6], 1 }
 0x4f5   :  { %653 = vsyncpa [#allocation12], 1 }

</bundles_post_ra>
